<compile_context>
chip_gen: v7x
topology: tpu7x:2x2x1
jax: 0.10.0
libtpu: 0.0.40
codegen_flags: <defaults>
</compile_context>

<pallas_src>
import jax
import jax.numpy as jnp
from jax.experimental import pallas as pl
from jax.experimental.pallas import tpu as pltpu

IN_FEATURES = 4
OUT_FEATURES = 4
PACK = 128 // IN_FEATURES          # 32 x-rows packed per 128-lane row
LANE_DIM = PACK * IN_FEATURES      # 128

TILE_ROWS = 8192                   # (8192, 128) f32 = 4 MiB per input tile
SINGLE_BLOCK_ROWS = 8192           # grid-free path up to 4 MiB in + 4 MiB out
VMEM_LIMIT_BYTES = 32 * 1024 * 1024


def _linear_mxu_kernel(x_ref, w_ref, b_ref, o_ref):
    # x_ref : (TR, 128) f32 VMEM   -- 32 batch rows packed per 128-lane row
    # w_ref : (128, 128) f32 VMEM  -- block-diagonal kron(I_32, W^T)
    # b_ref : (1, 128)  f32 VMEM   -- bias tiled 32x along the lane axis
    # o_ref : (TR, 128) f32 VMEM
    o_ref[...] = (
        jnp.dot(
            x_ref[...],
            w_ref[...],
            preferred_element_type=jnp.float32,
            precision=jax.lax.Precision.HIGHEST,
        )
        + b_ref[...]
    ).astype(o_ref.dtype)


def pytorch_model_forward(x, weight, bias):
    """Equivalent of PyTorchModel.forward / apply_model.

    Args:
      x:      (B, 4)  float32
      weight: (4, 4)  float32 -- PyTorch Linear weight (out_features, in_features)
      bias:   (4,)    float32
    Returns:
      (B, 4) float32 = x @ weight.T + bias
    """
    B, in_f = x.shape
    out_f = weight.shape[0]
    assert in_f == IN_FEATURES and out_f == OUT_FEATURES

    xf = x.astype(jnp.float32)
    w = weight.astype(jnp.float32)
    b = bias.astype(jnp.float32)

    # One-off, tiny host-side prep (64 KiB): 32 block-diagonal copies of W^T
    # and a 128-lane tiled bias.
    w_big = jnp.kron(jnp.eye(PACK, dtype=jnp.float32), w.T)        # (128, 128)
    b_big = jnp.tile(b, PACK).reshape(1, LANE_DIM)                 # (1, 128)

    # Free row-major view (B, 4) -> (R, 128). Pad by < 32 rows only when B is
    # not a multiple of 32 (no padding of the big tensor to tile multiples).
    pad_rows = (-B) % PACK
    if pad_rows:
        xf = jnp.pad(xf, ((0, pad_rows), (0, 0)))
    r = (B + pad_rows) // PACK
    x2 = xf.reshape(r, LANE_DIM)                                   # (R, 128)

    cost = pl.CostEstimate(
        flops=2 * r * LANE_DIM * LANE_DIM,
        transcendentals=0,
        bytes_accessed=2 * r * LANE_DIM * 4 + LANE_DIM * LANE_DIM * 4 + LANE_DIM * 4,
    )

    if r <= SINGLE_BLOCK_ROWS:
        # Moderate batch: one block, no grid, no pipeline overhead.
        out2 = pl.pallas_call(
            _linear_mxu_kernel,
            out_shape=jax.ShapeDtypeStruct((r, LANE_DIM), jnp.float32),
            in_specs=[
                pl.BlockSpec(memory_space=pltpu.MemorySpace.VMEM),  # x2
                pl.BlockSpec(memory_space=pltpu.MemorySpace.VMEM),  # w_big
                pl.BlockSpec(memory_space=pltpu.MemorySpace.VMEM),  # b_big
            ],
            out_specs=pl.BlockSpec(memory_space=pltpu.MemorySpace.VMEM),
            compiler_params=pltpu.CompilerParams(
                vmem_limit_bytes=VMEM_LIMIT_BYTES
            ),
            cost_estimate=cost,
        )(x2, w_big, b_big)
    else:
        # Large batch: stream 4 MiB row tiles; ragged last block handled by
        # Pallas (no pad / no slice). "parallel" shards across TCs on v7x.
        out2 = pl.pallas_call(
            _linear_mxu_kernel,
            out_shape=jax.ShapeDtypeStruct((r, LANE_DIM), jnp.float32),
            grid=(pl.cdiv(r, TILE_ROWS),),
            in_specs=[
                pl.BlockSpec((TILE_ROWS, LANE_DIM), lambda i: (i, 0)),
                pl.BlockSpec((LANE_DIM, LANE_DIM), lambda i: (0, 0)),  # resident
                pl.BlockSpec((1, LANE_DIM), lambda i: (0, 0)),         # resident
            ],
            out_specs=pl.BlockSpec((TILE_ROWS, LANE_DIM), lambda i: (i, 0)),
            compiler_params=pltpu.CompilerParams(
                dimension_semantics=("parallel",),
                vmem_limit_bytes=VMEM_LIMIT_BYTES,
            ),
            cost_estimate=cost,
        )(x2, w_big, b_big)

    out = out2.reshape(r * PACK, out_f)        # free reshape back to (B32, 4)
    if pad_rows:
        out = out[:B]
    return out.astype(x.dtype)


if __name__ == "__main__":
    key = jax.random.PRNGKey(0)
    k_w, k_b, k_x1, k_x2, k_x3 = jax.random.split(key, 5)

    # Deterministic "Linear(4, 4)" parameters, mimicking PyTorch's
    # uniform(-1/sqrt(in_features), 1/sqrt(in_features)) init.
    bound = 1.0 / (IN_FEATURES ** 0.5)
    weight = jax.random.uniform(
        k_w, (OUT_FEATURES, IN_FEATURES), jnp.float32, -bound, bound
    )
    bias = jax.random.uniform(k_b, (OUT_FEATURES,), jnp.float32, -bound, bound)

    def ref_fn(xv):
        return jnp.dot(xv, weight.T, precision=jax.lax.Precision.HIGHEST) + bias

    # Small case consistent with Linear(4, 4): batch=2
    # (exercises the pad-to-32 + grid-free single-block path).
    x_small = jax.random.normal(k_x1, (2, IN_FEATURES), jnp.float32)
    out_small = jax.block_until_ready(pytorch_model_forward(x_small, weight, bias))
    assert out_small.shape == (2, OUT_FEATURES)
    assert jnp.allclose(out_small, ref_fn(x_small), atol=1e-5, rtol=1e-5)

    # Multiple-of-32 batch: no padding, still grid-free.
    x_mid = jax.random.normal(k_x2, (160, IN_FEATURES), jnp.float32)
    out_mid = jax.block_until_ready(pytorch_model_forward(x_mid, weight, bias))
    assert out_mid.shape == (160, OUT_FEATURES)
    assert jnp.allclose(out_mid, ref_fn(x_mid), atol=1e-5, rtol=1e-5)

    # Large batch (> 262144 rows): exercises the tiled "parallel" grid path
    # with a ragged last block and no tensor-wide pad/slice.
    x_big = jax.random.normal(k_x3, (262245, IN_FEATURES), jnp.float32)
    out_big = jax.block_until_ready(pytorch_model_forward(x_big, weight, bias))
    assert out_big.shape == (262245, OUT_FEATURES)
    assert jnp.allclose(out_big, ref_fn(x_big), atol=1e-5, rtol=1e-5)

    print("KERNEL_OK")
</pallas_src>

<mosaic_0001>
module attributes {stable_mosaic.version = 11 : i64} {
  func.func @_linear_mxu_kernel(%arg0: memref<1x128xf32, #tpu.memory_space<vmem>>, %arg1: memref<128x128xf32, #tpu.memory_space<vmem>>, %arg2: memref<1x128xf32, #tpu.memory_space<vmem>>, %arg3: memref<1x128xf32, #tpu.memory_space<vmem>>) attributes {dimension_semantics = [], scalar_prefetch = 0 : i64, scratch_operands = 0 : i64, tpu.core_type = #tpu.core_type<tc>} {
    %c0 = arith.constant 0 : index
    %c0_0 = arith.constant 0 : index
    %0 = vector.load %arg0[%c0, %c0_0] : memref<1x128xf32, #tpu.memory_space<vmem>>, vector<1x128xf32>
    %c0_1 = arith.constant 0 : index
    %c0_2 = arith.constant 0 : index
    %1 = vector.load %arg1[%c0_1, %c0_2] : memref<128x128xf32, #tpu.memory_space<vmem>>, vector<128x128xf32>
    %cst = arith.constant dense<0.000000e+00> : vector<1x128xf32>
    %2 = tpu.matmul %0, %1, %cst {dimension_numbers = #tpu.dot_dimension_numbers<[1], [0], [0], [1], [0, 0, 1, 1], [], []>, precision = #tpu.contract_precision<fp32>} : vector<1x128xf32>, vector<128x128xf32>, vector<1x128xf32> -> vector<1x128xf32>
    %c0_3 = arith.constant 0 : index
    %c0_4 = arith.constant 0 : index
    %3 = vector.load %arg2[%c0_3, %c0_4] : memref<1x128xf32, #tpu.memory_space<vmem>>, vector<1x128xf32>
    %4 = arith.addf %2, %3 : vector<1x128xf32>
    %c0_5 = arith.constant 0 : index
    %c0_6 = arith.constant 0 : index
    %5 = vector.load %arg3[%c0_5, %c0_6] : memref<1x128xf32, #tpu.memory_space<vmem>>, vector<1x128xf32>
    tpu.vector_store %arg3[%c0_5, %c0_6], %4 {strides = array<i32>} : memref<1x128xf32, #tpu.memory_space<vmem>>, vector<1x128xf32>,
    return
  }
}

</mosaic_0001>

<bundles_post_ra>
// kernel: tpu_custom_call.1
= control target key start
LH: loop header
LB: loop body
LE: loop exit
PB: predicated region body
PF: predicated region fallthrough
CT: control target
= control target key end

     0   :  { %8 = vsyncpa [#allocation3], 0  ;;  %s1584_s0 = inlined_call_operand.hbm [shape: f32[1,128], index: 0, kind: input, shape index: {}]   ;;  %s1585_s1 = inlined_call_operand.hbm [shape: f32[128,128], index: 1, kind: input, shape index: {}]   ;;  %s1586_s2 = inlined_call_operand.vmem [shape: f32[1,128], index: 2, kind: input, shape index: {}]   ;;  %s1587_s3 = inlined_call_operand.hbm [shape: f32[1,128], index: 3, kind: output, shape index: {}]  }
   0x1   :  { %9 = vsyncpa [#allocation6], 0 }
   0x2   :  { %10 = vsyncpa [#allocation4], 0  ;;  %s1263_s12 = smov [#allocation2]   ;;  %s1264_s14 = smov [#allocation5]  }
   0x3   :  { %s17_s13 = sshll.u32 %s1263_s12, 4  ;;  %s26_s15 = sshll.u32 %s1264_s14, 4  ;;  %s18_s13 = int_to_ptr.vmem [resolvable:$true] %s17_s13  ;;  %s1291_s15 = int_to_ptr.vmem [resolvable:$true] %s26_s15 }
   0x4   :  { %s1191_s18 = scalar_lea.hbm %s1584_s0, 16 }
   0x5   :  { %p1192_p0 = scmp.ne.s32.totalorder %s1584_s0, %s1191_s18  ;;  %p1195_p1 = scmp.lt.u32.totalorder %s1191_s18, %s1584_s0 }
   0x7   :  { %p1197_p2 = pnand %p1195_p1, %p1192_p0 }
   0x9   :  { %1200 = shalt.err (!%p1197_p2)
}
   0xa   :  { %s1201_s23 = scalar_lea.vmem %s18_s13, 16  ;;  %s1205_s24 = scalar_lea.vmem %s18_s13, 32 }
   0xb   :  { %p1202_p3 = scmp.ne.s32.totalorder %s18_s13, %s1201_s23  ;;  %p1206_p4 = scmp.lt.s32.totalorder %s18_s13, %s18_s13 }
   0xc   :  { %p1207_p5 = scmp.lt.s32.totalorder %s1205_s24, %s1201_s23 }
   0xe   :  { %p1208_p6 = por %p1207_p5, %p1206_p4 }
  0x10   :  { %p1209_p7 = pnand %p1208_p6, %p1202_p3 }
  0x12   :  { %1212 = shalt.err (!%p1209_p7)
}
  0x13   :  { %20 = dma.hbm_to_vmem [thread:$0]  %s1584_s0, 16, %s18_s13, [#allocation3]  }
  0x14   :  { %s1213_s29 = scalar_lea.hbm %s1585_s1, 2048 }
  0x15   :  { %p1214_p8 = scmp.ne.s32.totalorder %s1585_s1, %s1213_s29  ;;  %p1217_p9 = scmp.lt.u32.totalorder %s1213_s29, %s1585_s1 }
  0x17   :  { %p1219_p10 = pnand %p1217_p9, %p1214_p8 }
  0x19   :  { %1222 = shalt.err (!%p1219_p10)
}
  0x1a   :  { %s1223_s7 = scalar_lea.vmem %s1291_s15, 2048  ;;  %p1228_p12 = scmp.lt.s32.totalorder %s1291_s15, %s1291_s15 }
  0x1b   :  { %p1224_p11 = scmp.ne.s32.totalorder %s1291_s15, %s1223_s7  ;;  %p1229_p13 = scmp.lt.s32.totalorder %s1223_s7, %s1223_s7 }
  0x1d   :  { %p1230_p0 = por %p1229_p13, %p1228_p12 }
  0x1f   :  { %p1231_p1 = pnand %p1230_p0, %p1224_p11 }
  0x21   :  { %1234 = shalt.err (!%p1231_p1)
}
  0x22   :  { %s1265_s0 = smov 128   ;;  %s1266_s8 = smov 8  }
  0x23   :  { %32 = dma.hbm_to_vmem [thread:$0]  %s1585_s1, 2048, %s1291_s15, [#allocation6], %s1265_s0, %s1265_s0, %s1266_s8  }
  0x24   :  { %1257 = dma.done.wait [#allocation3], 16  }
  0x25   :  { %1258 = vsyncadd [#allocation3], 4294967280 }
  0x26   :  { %1259 = dma.done.wait [#allocation6], 2048  }
  0x27   :  { %1260 = vsyncadd [#allocation6], 4294965248  ;;  %v1267_v0 = vmov 0.0|0.0   ;;  %vm1268_vm0 = vmmov 0   ;;  %v1269_v1 = vmov 0.0   ;;  %v42_v2 = vld [vmem:[#allocation5] sm:$0xff] }
  0x28   :  { %1029 = vmatprep.subr.bf16.mxu1 %v1267_v0  ;;  %1101 = vmatprep.subr.bf16.mxu0 %v1267_v0  ;;  %v43_v3 = vld [vmem:[#allocation5 + $0x8] sm:$0xff]  ;;  %v44_v4 = vld [vmem:[#allocation5 + $0x10] sm:$0xff]  ;;  %v60_v5 = vand.u32 4294901760, %v42_v2  ;;  %v45_v7 = vld [vmem:[#allocation5 + $0x18] sm:$0xff]  ;;  %s1270_s12 = smov [#allocation7]  }
  0x29   :  { %851 = vmatprep.mubr.msk.f32.mxu1 %vm1268_vm0, %v1269_v1  ;;  %956 = vmatprep.mubr.msk.f32.mxu0 %vm1268_vm0, %v1269_v1  ;;  %v63_v6 = vand.u32 4294901760, %v43_v3  ;;  %v66_v8 = vand.u32 4294901760, %v44_v4  ;;  %v69_v9 = vand.u32 4294901760, %v45_v7  ;;  %v46_v10 = vld [vmem:[#allocation5 + $0x20] sm:$0xff]  ;;  %v47_v11 = vld [vmem:[#allocation5 + $0x28] sm:$0xff]  ;;  %v48_v16 = vld [vmem:[#allocation5 + $0x30] sm:$0xff] }
  0x2a   :  { %v72_v14 = vand.u32 4294901760, %v46_v10  ;;  %v75_v15 = vand.u32 4294901760, %v47_v11  ;;  %v49_v17 = vld [vmem:[#allocation5 + $0x38] sm:$0xff]  ;;  %v78_v19 = vand.u32 4294901760, %v48_v16  ;;  %v1342_v21 = vld [vmem:[#allocation5 + $0x40] sm:$0xff]  ;;  %v1344_v22 = vld [vmem:[#allocation5 + $0x48] sm:$0xff]  ;;  %v1358_v29 = vsub.f32 %v42_v2, %v60_v5 }
  0x2b   :  { %v1328_v12 = vpack.c.bf16 %v63_v6, %v60_v5  ;;  %v1332_v13 = vpack.c.bf16 %v69_v9, %v66_v8  ;;  %v81_v20 = vand.u32 4294901760, %v49_v17  ;;  %v84_v24 = vand.u32 4294901760, %v1342_v21  ;;  %v41_v26 = vld [vmem:[#allocation2] sm:$0x1]  ;;  %v1354_v27 = vld [vmem:[#allocation5 + $0x50] sm:$0xff]  ;;  %v1370_v35 = vld [vmem:[#allocation5 + $0x60] sm:$0xff] }
  0x2c   :  { %v1338_v18 = vpack.c.bf16 %v75_v15, %v72_v14  ;;  %v87_v25 = vand.u32 4294901760, %v1344_v22  ;;  %v1356_v28 = vld [vmem:[#allocation5 + $0x58] sm:$0xff]  ;;  %v1360_v30 = vand.u32 4294901760, %v41_v26  ;;  %v1362_v31 = vsub.f32 %v43_v3, %v63_v6  ;;  %v1374_v36 = vld [vmem:[#allocation5 + $0x68] sm:$0xff]  ;;  %v1393_v43 = vld [vmem:[#allocation5 + $0x70] sm:$0xff]  ;;  %s707_s13 = sshll.u32 %s1270_s12, 4  ;;  %s708_s13 = int_to_ptr.vmem [resolvable:$true] %s707_s13 }
  0x2d   :  { %1031 = vmatpush3.bf16.msra.mxu1 %v1328_v12  ;;  %1103 = vmatpush3.bf16.msra.mxu0 %v1328_v12  ;;  %v1348_v23 = vpack.c.bf16 %v81_v20, %v78_v19  ;;  %v90_v33 = vand.u32 4294901760, %v1354_v27  ;;  %v93_v34 = vand.u32 4294901760, %v1356_v28  ;;  %v1376_v37 = vsub.f32 %v44_v4, %v66_v8  ;;  %v1395_v44 = vld [vmem:[#allocation5 + $0x78] sm:$0xff]  ;;  %s1235_s14 = scalar_lea.vmem %s708_s13, 16  ;;  %s1239_s15 = scalar_lea.vmem %s708_s13, 32 }
  0x2e   :  { %1032 = vmatprep.subr.bf16.mxu1 %v1267_v0  ;;  %1104 = vmatprep.subr.bf16.mxu0 %v1267_v0  ;;  %v1366_v32 = vpack.c.bf16 %v87_v25, %v84_v24  ;;  %v1378_v38 = vsub.f32 %v45_v7, %v69_v9  ;;  %v96_v39 = vand.u32 4294901760, %v1370_v35  ;;  %v1382_v40 = vsub.f32 %v41_v26, %v1360_v30  ;;  %p1236_p2 = scmp.ne.s32.totalorder %s708_s13, %s1235_s14  ;;  %p1240_p3 = scmp.lt.s32.totalorder %s708_s13, %s708_s13 }
  0x2f   :  { %v1390_v41 = vpack.c.bf16 %v93_v34, %v90_v33  ;;  %v99_v42 = vand.u32 4294901760, %v1374_v36  ;;  %v153_v45 = vand.u32 4294901760, %v1358_v29  ;;  %v160_v46 = vand.u32 4294901760, %v1362_v31  ;;  %p1241_p4 = scmp.lt.s32.totalorder %s1239_s15, %s1235_s14 }
  0x30   :  { %v1401_v47 = vsub.f32 %v46_v10, %v72_v14  ;;  %v1403_v48 = vsub.f32 %v47_v11, %v75_v15  ;;  %v102_v49 = vand.u32 4294901760, %v1393_v43  ;;  %v105_v50 = vand.u32 4294901760, %v1395_v44 }
  0x31   :  { %1034 = vmatpush3.bf16.msra.mxu1 %v1332_v13  ;;  %1106 = vmatpush3.bf16.msra.mxu0 %v1332_v13  ;;  %v142_v51 = vand.u32 4294901760, %v1382_v40  ;;  %v167_v52 = vand.u32 4294901760, %v1376_v37  ;;  %v1415_v53 = vpack.c.bf16 %v99_v42, %v96_v39  ;;  %v154_v54 = vsub.f32 %v1358_v29, %v153_v45  ;;  %p1242_p5 = por %p1241_p4, %p1240_p3 }
  0x32   :  { %1035 = vmatprep.subr.bf16.mxu1 %v1267_v0  ;;  %1107 = vmatprep.subr.bf16.mxu0 %v1267_v0  ;;  %v161_v55 = vsub.f32 %v1362_v31, %v160_v46  ;;  %v174_v56 = vand.u32 4294901760, %v1378_v38  ;;  %v1422_v57 = vsub.f32 %v48_v16, %v78_v19  ;;  %v1424_v58 = vsub.f32 %v49_v17, %v81_v20 }
  0x33   :  { %v143_v59 = vsub.f32 %v1382_v40, %v142_v51  ;;  %v168_v60 = vsub.f32 %v1376_v37, %v167_v52  ;;  %v181_v61 = vand.u32 4294901760, %v1401_v47  ;;  %v188_v62 = vand.u32 4294901760, %v1403_v48  ;;  %p1243_p6 = pnand %p1242_p5, %p1236_p2 }
  0x34   :  { %v1436_v63 = vpack.c.bf16 %v105_v50, %v102_v49  ;;  %v155_v2 = vand.u32 4294901760, %v154_v54  ;;  %v162_v3 = vand.u32 4294901760, %v161_v55  ;;  %v175_v4 = vsub.f32 %v1378_v38, %v174_v56 }
  0x35   :  { %1037 = vmatpush3.bf16.msra.mxu1 %v1338_v18  ;;  %1109 = vmatpush3.bf16.msra.mxu0 %v1338_v18  ;;  %v1442_v5 = vsub.f32 %v1342_v21, %v84_v24  ;;  %v1445_v6 = vsub.f32 %v1344_v22, %v87_v25  ;;  %v1126_v7 = vpack.c.bf16 %v160_v46, %v153_v45  ;;  %v144_v8 = vand.u32 4294901760, %v143_v59 }
  0x36   :  { %1038 = vmatprep.subr.bf16.mxu1 %v1267_v0  ;;  %1110 = vmatprep.subr.bf16.mxu0 %v1267_v0  ;;  %v169_v9 = vand.u32 4294901760, %v168_v60  ;;  %v182_v10 = vsub.f32 %v1401_v47, %v181_v61  ;;  %v189_v11 = vsub.f32 %v1403_v48, %v188_v62  ;;  %v1054_v14 = vpack.c.bf16 %v162_v3, %v155_v2 }
  0x37   :  { %v176_v15 = vand.u32 4294901760, %v175_v4  ;;  %v195_v16 = vand.u32 4294901760, %v1422_v57  ;;  %v202_v17 = vand.u32 4294901760, %v1424_v58  ;;  %v1458_v19 = vsub.f32 %v1354_v27, %v90_v33 }
  0x38   :  { %v1463_v20 = vsub.f32 %v1356_v28, %v93_v34  ;;  %v1129_v21 = vpack.c.bf16 %v174_v56, %v167_v52  ;;  %v183_v22 = vand.u32 4294901760, %v182_v10  ;;  %v190_v24 = vand.u32 4294901760, %v189_v11 }
  0x39   :  { %1040 = vmatpush3.bf16.msra.mxu1 %v1348_v23  ;;  %1112 = vmatpush3.bf16.msra.mxu0 %v1348_v23  ;;  %v209_v25 = vand.u32 4294901760, %v1442_v5  ;;  %v1057_v26 = vpack.c.bf16 %v176_v15, %v169_v9  ;;  %v196_v45 = vsub.f32 %v1422_v57, %v195_v16  ;;  %v203_v27 = vsub.f32 %v1424_v58, %v202_v17 }
  0x3a   :  { %1041 = vmatprep.subr.bf16.mxu1 %v1267_v0  ;;  %1113 = vmatprep.subr.bf16.mxu0 %v1267_v0  ;;  %v216_v33 = vand.u32 4294901760, %v1445_v6  ;;  %v1474_v28 = vsub.f32 %v1370_v35, %v96_v39  ;;  %v1479_v34 = vsub.f32 %v1374_v36, %v99_v42  ;;  %v1060_v46 = vpack.c.bf16 %v190_v24, %v183_v22 }
  0x3b   :  { %v210_v52 = vsub.f32 %v1442_v5, %v209_v25  ;;  %v223_v54 = vand.u32 4294901760, %v1458_v19  ;;  %v197_v35 = vand.u32 4294901760, %v196_v45  ;;  %v204_v39 = vand.u32 4294901760, %v203_v27 }
  0x3c   :  { %v217_v55 = vsub.f32 %v1445_v6, %v216_v33  ;;  %v230_v36 = vand.u32 4294901760, %v1463_v20  ;;  %v1494_v42 = vsub.f32 %v1393_v43, %v102_v49  ;;  %v1499_v56 = vsub.f32 %v1395_v44, %v105_v50 }
  0x3d   :  { %1043 = vmatpush3.bf16.msra.mxu1 %v1366_v32  ;;  %1115 = vmatpush3.bf16.msra.mxu0 %v1366_v32  ;;  %v1135_v59 = vpack.c.bf16 %v202_v17, %v195_v16  ;;  %v211_v60 = vand.u32 4294901760, %v210_v52  ;;  %v1063_v2 = vpack.c.bf16 %v204_v39, %v197_v35  ;;  %v244_v43 = vand.u32 4294901760, %v1479_v34 }
  0x3e   :  { %1044 = vmatprep.subr.bf16.mxu1 %v1267_v0  ;;  %1116 = vmatprep.subr.bf16.mxu0 %v1267_v0  ;;  %v218_v3 = vand.u32 4294901760, %v217_v55  ;;  %v231_v4 = vsub.f32 %v1463_v20, %v230_v36  ;;  %v1138_v44 = vpack.c.bf16 %v216_v33, %v209_v25  ;;  %v258_v11 = vand.u32 4294901760, %v1499_v56 }
  0x3f   :  { %v245_v10 = vsub.f32 %v1479_v34, %v244_v43 }
  0x40   :  { %v232_v9 = vand.u32 4294901760, %v231_v4  ;;  %v259_v22 = vsub.f32 %v1499_v56, %v258_v11 }
  0x41   :  { %1046 = vmatpush3.bf16.msra.mxu1 %v1390_v41  ;;  %1118 = vmatpush3.bf16.msra.mxu0 %v1390_v41  ;;  %v246_v17 = vand.u32 4294901760, %v245_v10 }
  0x42   :  { %1047 = vmatprep.subr.bf16.mxu1 %v1267_v0  ;;  %1119 = vmatprep.subr.bf16.mxu0 %v1267_v0  ;;  %v260_v45 = vand.u32 4294901760, %v259_v22 }
  0x45   :  { %1049 = vmatpush3.bf16.msra.mxu1 %v1415_v53  ;;  %1121 = vmatpush3.bf16.msra.mxu0 %v1415_v53 }
  0x46   :  { %1050 = vmatprep.subr.bf16.mxu1 %v1267_v0  ;;  %1122 = vmatprep.subr.bf16.mxu0 %v1267_v0 }
  0x49   :  { %1052 = vmatpush3.bf16.msra.mxu1 %v1436_v63  ;;  %1124 = vmatpush3.bf16.msra.mxu0 %v1436_v63 }
  0x4a   :  { %1053 = vmatprep.subr.bf16.mxu1 %v1267_v0  ;;  %1125 = vmatprep.subr.bf16.mxu0 %v1267_v0 }
  0x4c   :  { %852 = vmatmul.mubr.f32.vlgmr.msra.gmra.mrb[0].mxu1 %v144_v8  ;;  %957 = vmatmul.mubr.f32.vlgmr.msra.gmra.mrb[0].mxu0 %v142_v51  ;;  %v1132_v51 = vpack.c.bf16 %v188_v62, %v181_v61  ;;  %v224_v61 = vsub.f32 %v1458_v19, %v223_v54  ;;  %v237_v62 = vand.u32 4294901760, %v1474_v28  ;;  %v1066_v8 = vpack.c.bf16 %v218_v3, %v211_v60 }
  0x4d   :  { %1055 = vmatpush3.bf16.msra.mxu1 %v1054_v14  ;;  %1127 = vmatpush3.bf16.msra.mxu0 %v1126_v7  ;;  %v251_v7 = vand.u32 4294901760, %v1494_v42  ;;  %v1141_v14 = vpack.c.bf16 %v230_v36, %v223_v54 }
  0x4e   :  { %1056 = vmatprep.subr.bf16.mxu1 %v1267_v0  ;;  %1128 = vmatprep.subr.bf16.mxu0 %v1267_v0  ;;  %v225_v49 = vand.u32 4294901760, %v224_v61  ;;  %v238_v50 = vsub.f32 %v1474_v28, %v237_v62  ;;  %v1144_v25 = vpack.c.bf16 %v244_v43, %v237_v62 }
  0x4f   :  { %886 = vmatprep.mubr.msk.f32.mxu1 %vm1268_vm0, %v1269_v1  ;;  %991 = vmatprep.mubr.msk.f32.mxu0 %vm1268_vm0, %v1269_v1  ;;  %v1147_v33 = vpack.c.bf16 %v258_v11, %v251_v7 }
  0x50   :  { %v239_v15 = vand.u32 4294901760, %v238_v50  ;;  %v1069_v16 = vpack.c.bf16 %v232_v9, %v225_v49 }
  0x51   :  { %1058 = vmatpush3.bf16.msra.mxu1 %v1057_v26  ;;  %1130 = vmatpush3.bf16.msra.mxu0 %v1129_v21  ;;  %v252_v21 = vsub.f32 %v1494_v42, %v251_v7 }
  0x52   :  { %1059 = vmatprep.subr.bf16.mxu1 %v1267_v0  ;;  %1131 = vmatprep.subr.bf16.mxu0 %v1267_v0  ;;  %v1072_v24 = vpack.c.bf16 %v246_v17, %v239_v15 }
  0x53   :  { %v253_v26 = vand.u32 4294901760, %v252_v21 }
  0x55   :  { %1061 = vmatpush3.bf16.msra.mxu1 %v1060_v46  ;;  %1133 = vmatpush3.bf16.msra.mxu0 %v1132_v51  ;;  %v1075_v27 = vpack.c.bf16 %v260_v45, %v253_v26  ;;  %v1078_v46 = vpack.c.bf16 %v1362_v31, %v1358_v29  ;;  %v1081_v51 = vpack.c.bf16 %v1378_v38, %v1376_v37  ;;  %v58_v31 = vld [vmem:[%s1586_s2] sm:$0x1] }
  0x56   :  { %1062 = vmatprep.subr.bf16.mxu1 %v1267_v0  ;;  %1134 = vmatprep.subr.bf16.mxu0 %v1267_v0  ;;  %v1084_v29 = vpack.c.bf16 %v1403_v48, %v1401_v47 }
  0x59   :  { %1064 = vmatpush3.bf16.msra.mxu1 %v1063_v2  ;;  %1136 = vmatpush3.bf16.msra.mxu0 %v1135_v59 }
  0x5a   :  { %1065 = vmatprep.subr.bf16.mxu1 %v1267_v0  ;;  %1137 = vmatprep.subr.bf16.mxu0 %v1267_v0 }
  0x5d   :  { %1067 = vmatpush3.bf16.msra.mxu1 %v1066_v8  ;;  %1139 = vmatpush3.bf16.msra.mxu0 %v1138_v44 }
  0x5e   :  { %1068 = vmatprep.subr.bf16.mxu1 %v1267_v0  ;;  %1140 = vmatprep.subr.bf16.mxu0 %v1267_v0 }
  0x61   :  { %1070 = vmatpush3.bf16.msra.mxu1 %v1069_v16  ;;  %1142 = vmatpush3.bf16.msra.mxu0 %v1141_v14 }
  0x62   :  { %1071 = vmatprep.subr.bf16.mxu1 %v1267_v0  ;;  %1143 = vmatprep.subr.bf16.mxu0 %v1267_v0 }
  0x65   :  { %1073 = vmatpush3.bf16.msra.mxu1 %v1072_v24  ;;  %1145 = vmatpush3.bf16.msra.mxu0 %v1144_v25 }
  0x66   :  { %1074 = vmatprep.subr.bf16.mxu1 %v1267_v0  ;;  %1146 = vmatprep.subr.bf16.mxu0 %v1267_v0 }
  0x69   :  { %1076 = vmatpush3.bf16.msra.mxu1 %v1075_v27  ;;  %1148 = vmatpush3.bf16.msra.mxu0 %v1147_v33 }
  0x6a   :  { %1077 = vmatprep.subr.bf16.mxu1 %v1267_v0  ;;  %1149 = vmatprep.subr.bf16.mxu0 %v1267_v0 }
  0x6c   :  { %887 = vmatmul.mubr.f32.vlgmr.msra.gmra.mrb[0].mxu1 %v1360_v30  ;;  %992 = vmatmul.mubr.f32.vlgmr.msra.gmra.mrb[0].mxu0 %v1360_v30 }
  0x6d   :  { %1079 = vmatpush3.bf16.msra.mxu1 %v1078_v46  ;;  %1151 = vmatpush3.bf16.msra.mxu0 %v1328_v12  ;;  %v1087_v12 = vpack.c.bf16 %v1424_v58, %v1422_v57 }
  0x6e   :  { %1080 = vmatprep.subr.bf16.mxu1 %v1267_v0  ;;  %1152 = vmatprep.subr.bf16.mxu0 %v1267_v0 }
  0x6f   :  { %921 = vmatprep.mubr.msk.f32.mxu1 %vm1268_vm0, %v1269_v1  ;;  %1026 = vmatprep.mubr.msk.f32.mxu0 %vm1268_vm0, %v1269_v1  ;;  %v1090_v1 = vpack.c.bf16 %v1445_v6, %v1442_v5 }
  0x71   :  { %1082 = vmatpush3.bf16.msra.mxu1 %v1081_v51  ;;  %1154 = vmatpush3.bf16.msra.mxu0 %v1332_v13  ;;  %v1093_v13 = vpack.c.bf16 %v1463_v20, %v1458_v19 }
  0x72   :  { %1083 = vmatprep.subr.bf16.mxu1 %v1267_v0  ;;  %1155 = vmatprep.subr.bf16.mxu0 %v1267_v0 }
  0x75   :  { %1085 = vmatpush3.bf16.msra.mxu1 %v1084_v29  ;;  %1157 = vmatpush3.bf16.msra.mxu0 %v1338_v18  ;;  %v1096_v18 = vpack.c.bf16 %v1479_v34, %v1474_v28 }
  0x76   :  { %1086 = vmatprep.subr.bf16.mxu1 %v1267_v0  ;;  %1158 = vmatprep.subr.bf16.mxu0 %v1267_v0 }
  0x79   :  { %1088 = vmatpush3.bf16.msra.mxu1 %v1087_v12  ;;  %1160 = vmatpush3.bf16.msra.mxu0 %v1348_v23  ;;  %v1099_v23 = vpack.c.bf16 %v1499_v56, %v1494_v42 }
  0x7a   :  { %1089 = vmatprep.subr.bf16.mxu1 %v1267_v0  ;;  %1161 = vmatprep.subr.bf16.mxu0 %v1267_v0 }
  0x7d   :  { %1091 = vmatpush3.bf16.msra.mxu1 %v1090_v1  ;;  %1163 = vmatpush3.bf16.msra.mxu0 %v1366_v32 }
  0x7e   :  { %1092 = vmatprep.subr.bf16.mxu1 %v1267_v0  ;;  %1164 = vmatprep.subr.bf16.mxu0 %v1267_v0 }
  0x81   :  { %1094 = vmatpush3.bf16.msra.mxu1 %v1093_v13  ;;  %1166 = vmatpush3.bf16.msra.mxu0 %v1390_v41 }
  0x82   :  { %1095 = vmatprep.subr.bf16.mxu1 %v1267_v0  ;;  %1167 = vmatprep.subr.bf16.mxu0 %v1267_v0 }
  0x85   :  { %1097 = vmatpush3.bf16.msra.mxu1 %v1096_v18  ;;  %1169 = vmatpush3.bf16.msra.mxu0 %v1415_v53 }
  0x86   :  { %1098 = vmatprep.subr.bf16.mxu1 %v1267_v0  ;;  %1170 = vmatprep.subr.bf16.mxu0 %v1267_v0 }
  0x89   :  { %1100 = vmatpush3.bf16.msra.mxu1 %v1099_v23  ;;  %1172 = vmatpush3.bf16.msra.mxu0 %v1436_v63 }
  0x8c   :  { %922 = vmatmul.mubr.f32.vlgmr.msra.gmra.mrb[0].mxu1 %v1382_v40  ;;  %1027 = vmatmul.mubr.f32.vlgmr.msra.gmra.mrb[0].mxu0 %v1360_v30 }
 0x15f   :  { %v401_v32 = vpop.f32.mrb[0].mxu1  ;;  %v696_v37 = vpop.f32.mrb[0].mxu0 }
 0x160   :  { %v1173_v38 = vadd.f32 %v401_v32, %v58_v31  ;;  %v923_v41 = vpop.f32.mrb[1].mxu1  ;;  %v1028_v47 = vpop.f32.mrb[1].mxu0 }
 0x162   :  { %v1174_v48 = vadd.f32 %v1173_v38, %v696_v37 }
 0x164   :  { %700 = vst [vmem:[#allocation7] sm:$0x1] %v1174_v48 }
 0x165   :  { %1246 = shalt.err (!%p1243_p6)
}
 0x166   :  { %s1247_s17 = scalar_lea.hbm %s1587_s3, 16 }
 0x167   :  { %p1248_p7 = scmp.ne.s32.totalorder %s1587_s3, %s1247_s17  ;;  %p1251_p8 = scmp.lt.u32.totalorder %s1247_s17, %s1587_s3 }
 0x169   :  { %p1253_p9 = pnand %p1251_p8, %p1248_p7 }
 0x16b   :  { %1256 = shalt.err (!%p1253_p9)
}
 0x16c   :  { %710 = dma.vmem_to_hbm [thread:$0]  %s708_s13, 16, %s1587_s3, [#allocation4]  }
 0x16d   :  { %1261 = dma.done.wait [#allocation4], 16  }
 0x16e   :  { %1262 = vsyncadd [#allocation4], 4294967280 }
 0x16f   :  { %714 = vsyncpa [#allocation3], 1 }
 0x170   :  { %715 = vsyncpa [#allocation6], 1 }
 0x171   :  { %716 = vsyncpa [#allocation4], 1 }

</bundles_post_ra>
